<compile_context>
chip_gen: v6e
topology: v6e:2x2x1
jax: 0.10.0
libtpu: 0.0.40
codegen_flags: <defaults>
</compile_context>

<pallas_src>
import functools

import jax
import jax.numpy as jnp
from jax import lax
from jax.experimental import pallas as pl
from jax.experimental.pallas import tpu as pltpu


def _round_up(x, m):
    return ((x + m - 1) // m) * m


def _vmem_capacity_bytes():
    try:
        return int(pltpu.get_tpu_info().vmem_capacity_bytes)
    except Exception:
        return 64 << 20  # conservative (v7x per-TC physical VMEM)


def _svmo_kernel(w_ref, x_ref, out_ref, ata_ref, *, beta):
    """Grid axis 0 tiles M (reduction). ATA is accumulated in a VMEM scratch in
    float32; the Rayleigh-quotient / output math runs on the last grid step."""
    k = pl.program_id(0)

    @pl.when(k == 0)
    def _():
        ata_ref[...] = jnp.zeros_like(ata_ref)

    # Hot path: ATA += W_tile @ W_tile^T on the MXU.  Contract the lane axis of
    # both operands directly so no transposed copy of the tile is materialized;
    # accumulate in f32 regardless of the streamed dtype (f32 or bf16).
    w = w_ref[...]                                         # (S, tk), native dtype
    ata_ref[...] += lax.dot_general(
        w, w,
        dimension_numbers=(((1,), (1,)), ((), ())),
        preferred_element_type=jnp.float32)

    @pl.when(k == pl.num_programs(0) - 1)
    def _():
        ata = ata_ref[...]                        # (S, S), float32
        S = ata.shape[0]
        x1 = x_ref[:, 0:1].astype(jnp.float32)    # (S, 1)
        x2 = x_ref[:, 1:2].astype(jnp.float32)    # (S, 1)

        def dominant_eigenvalue(B, x):
            # Matrix-vector products as broadcast-multiply + lane reduction
            # (tiny S x S work; avoids degenerate 1-lane MXU matmuls).
            Ax = jnp.sum(B * x.T, axis=-1, keepdims=True)     # (S, 1)
            AAx = jnp.sum(B * Ax.T, axis=-1, keepdims=True)   # (S, 1)
            return jnp.sum(AAx * Ax) / jnp.sum(Ax * Ax)

        largest = dominant_eigenvalue(ata, x1)

        # Subtract `largest` only on the diagonal (no eye materialization).
        row = lax.broadcasted_iota(jnp.int32, (S, S), 0)
        col = lax.broadcasted_iota(jnp.int32, (S, S), 1)
        shifted = jnp.where(row == col, ata - largest, ata)

        tmp = dominant_eigenvalue(shifted, x2)
        smallest = tmp + largest
        val = beta * 10.0 * (largest - smallest) ** 2
        out_ref[...] = val * jnp.ones((1, 1), jnp.float32)


def svmo_regularizer(W, x1, x2, beta):
    """W: (S, C, H, Wd).  x1, x2: (S, 1) random vectors (torch.rand analogue)."""
    S = W.shape[0]
    if S == 1:
        # PyTorch returns python int 0 for a single filter.
        return jnp.float32(0.0)

    M = 1
    for d in W.shape[1:]:
        M *= d
    W_flat = W.reshape(S, M)
    x = jnp.concatenate([x1, x2], axis=1).astype(jnp.float32)  # (S, 2)

    # ---- VMEM-budget-derived reduction tile ---------------------------------
    itemsize = jnp.dtype(W_flat.dtype).itemsize
    vmem_limit = int(min(_vmem_capacity_bytes() // 2, 64 << 20))
    acc_bytes = S * S * 4
    # Budget for the double-buffered streamed W tile; keep half the scoped
    # limit for the accumulator, x, and compiler internals.
    input_budget = max(2 * S * 128 * itemsize, vmem_limit // 2 - acc_bytes)
    tk_cap = input_budget // (2 * S * itemsize)
    tk_cap = max(128, (tk_cap // 128) * 128)
    tk_cap = min(tk_cap, 8192)

    if M <= tk_cap:
        tk = _round_up(M, 128)          # single grid step for small layers
    else:
        tk = int(tk_cap)
    M_pad = _round_up(M, tk)
    if M_pad != M:
        # Zero columns contribute exactly 0 to ATA -> bit-safe padding.
        W_flat = jnp.pad(W_flat, ((0, 0), (0, M_pad - M)))
    grid = (M_pad // tk,)

    out = pl.pallas_call(
        functools.partial(_svmo_kernel, beta=float(beta)),
        out_shape=jax.ShapeDtypeStruct((1, 1), jnp.float32),
        grid_spec=pltpu.PrefetchScalarGridSpec(
            num_scalar_prefetch=0,
            grid=grid,
            in_specs=[
                pl.BlockSpec((S, tk), lambda k: (0, k)),   # W_flat tile over M
                pl.BlockSpec((S, 2), lambda k: (0, 0)),    # random vectors, resident
            ],
            out_specs=pl.BlockSpec((1, 1), lambda k: (0, 0)),
            scratch_shapes=[pltpu.VMEM((S, S), jnp.float32)],
        ),
        compiler_params=pltpu.CompilerParams(
            dimension_semantics=("arbitrary",),
            vmem_limit_bytes=vmem_limit),
    )(W_flat, x)
    return out[0, 0]


def _reference(W, x1, x2, beta):
    """Pure-JAX reference mirroring the PyTorch code."""
    S = W.shape[0]
    W_flat = W.reshape(S, -1).astype(jnp.float32)
    A = W_flat.T                                             # (M, S)
    ATA = jnp.dot(A.T, A, precision="highest")               # (S, S)

    def dom(B, x):
        Ax = B @ x
        AAx = B @ Ax
        return (AAx.T @ Ax) / (Ax.T @ Ax)

    largest = dom(ATA, x1)
    I = jnp.eye(S, dtype=jnp.float32) * largest
    tmp = dom(ATA - I, x2)
    smallest = tmp + largest
    return jnp.squeeze(beta * 10.0 * (largest - smallest) ** 2)


def _check_case(key, shape, dtype, beta):
    k_w, k_x1, k_x2 = jax.random.split(key, 3)
    S = shape[0]
    W = jax.random.normal(k_w, shape, dtype=jnp.float32).astype(dtype)
    x1 = jax.random.uniform(k_x1, (S, 1), dtype=jnp.float32)
    x2 = jax.random.uniform(k_x2, (S, 1), dtype=jnp.float32)

    out = jax.block_until_ready(svmo_regularizer(W, x1, x2, beta))
    ref = _reference(W, x1, x2, beta)
    if not bool(jnp.isfinite(out)):
        raise RuntimeError(f"non-finite output for shape {shape} dtype {dtype}")
    if not bool(jnp.allclose(out, ref, rtol=5e-2, atol=1e-5)):
        raise RuntimeError(f"mismatch shape={shape} dtype={dtype}: "
                           f"kernel={out} ref={ref}")


if __name__ == "__main__":
    beta = 1e-3  # args['ow_beta'] -- deterministic synthetic choice
    key = jax.random.PRNGKey(0)
    k1, k2, k3 = jax.random.split(key, 3)

    # Conv-weight-like tensor: S=8 out-ch, C=8 in-ch, 8x8 kernel (M=512, grid=(1,)).
    _check_case(k1, (8, 8, 8, 8), jnp.float32, beta)
    # Non-128-multiple reduction (M=27) exercising the zero-padding path.
    _check_case(k2, (16, 3, 3, 3), jnp.float32, beta)
    # bf16 weights streamed natively into the MXU with f32 accumulation.
    _check_case(k3, (8, 4, 3, 3), jnp.bfloat16, beta)

    print("KERNEL_OK")
</pallas_src>

<mosaic_0001>
module attributes {stable_mosaic.version = 11 : i64} {
  func.func @_svmo_kernel(%arg0: i32, %arg1: memref<8x512xf32, #tpu.memory_space<vmem>>, %arg2: memref<8x2xf32, #tpu.memory_space<vmem>>, %arg3: memref<1x1xf32, #tpu.memory_space<vmem>>, %arg4: memref<8x8xf32, #tpu.memory_space<vmem>>) attributes {dimension_semantics = [#tpu.dimension_semantics<arbitrary>], iteration_bounds = array<i64: 1>, scalar_prefetch = 0 : i64, scratch_operands = 1 : i64, tpu.core_type = #tpu.core_type<tc>, window_params = [{transform_indices = @transform_0, window_bounds = array<i64: 8, 512>}, {pipeline_mode = #tpu.pipeline_mode<synchronous>, transform_indices = @transform_1, window_bounds = array<i64: 8, 2>}, {pipeline_mode = #tpu.pipeline_mode<synchronous>, transform_indices = @transform_2, window_bounds = array<i64: 1, 1>}]} {
    %c0_i32 = arith.constant 0 : i32
    %0 = arith.cmpi eq, %arg0, %c0_i32 : i32
    %1 = arith.extui %0 : i1 to i32
    %c0_i32_0 = arith.constant 0 : i32
    %2 = arith.cmpi ne, %1, %c0_i32_0 : i32
    scf.if %2 {
      %cst_8 = arith.constant 0.000000e+00 : f32
      %11 = vector.broadcast %cst_8 : f32 to vector<8x8xf32>
      %c0_9 = arith.constant 0 : index
      %c0_10 = arith.constant 0 : index
      %12 = vector.load %arg4[%c0_9, %c0_10] : memref<8x8xf32, #tpu.memory_space<vmem>>, vector<8x8xf32>
      tpu.vector_store %arg4[%c0_9, %c0_10], %11 {strides = array<i32>} : memref<8x8xf32, #tpu.memory_space<vmem>>, vector<8x8xf32>,
    } else {
    }
    %c0 = arith.constant 0 : index
    %c0_1 = arith.constant 0 : index
    %3 = vector.load %arg1[%c0, %c0_1] : memref<8x512xf32, #tpu.memory_space<vmem>>, vector<8x512xf32>
    %c0_2 = arith.constant 0 : index
    %c0_3 = arith.constant 0 : index
    %4 = vector.load %arg4[%c0_2, %c0_3] : memref<8x8xf32, #tpu.memory_space<vmem>>, vector<8x8xf32>
    %cst = arith.constant dense<0.000000e+00> : vector<8x8xf32>
    %5 = tpu.matmul %3, %3, %cst {dimension_numbers = #tpu.dot_dimension_numbers<[1], [1], [0], [0], [0, 0, 1, 0], [], []>} : vector<8x512xf32>, vector<8x512xf32>, vector<8x8xf32> -> vector<8x8xf32>
    %6 = arith.addf %4, %5 : vector<8x8xf32>
    %c0_4 = arith.constant 0 : index
    %c0_5 = arith.constant 0 : index
    %7 = vector.load %arg4[%c0_4, %c0_5] : memref<8x8xf32, #tpu.memory_space<vmem>>, vector<8x8xf32>
    tpu.vector_store %arg4[%c0_4, %c0_5], %6 {strides = array<i32>} : memref<8x8xf32, #tpu.memory_space<vmem>>, vector<8x8xf32>,
    %c0_i32_6 = arith.constant 0 : i32
    %8 = arith.cmpi eq, %arg0, %c0_i32_6 : i32
    %9 = arith.extui %8 : i1 to i32
    %c0_i32_7 = arith.constant 0 : i32
    %10 = arith.cmpi ne, %9, %c0_i32_7 : i32
    scf.if %10 {
      %c0_8 = arith.constant 0 : index
      %c0_9 = arith.constant 0 : index
      %11 = vector.load %arg4[%c0_8, %c0_9] : memref<8x8xf32, #tpu.memory_space<vmem>>, vector<8x8xf32>
      %c0_10 = arith.constant 0 : index
      %c0_11 = arith.constant 0 : index
      %12 = vector.load %arg2[%c0_10, %c0_11] : memref<8x2xf32, #tpu.memory_space<vmem>>, vector<8x1xf32>
      %c0_12 = arith.constant 0 : index
      %c1 = arith.constant 1 : index
      %13 = vector.load %arg2[%c0_12, %c1] : memref<8x2xf32, #tpu.memory_space<vmem>>, vector<8x1xf32>
      %14 = tpu.transpose %12, [1, 0] : vector<8x1xf32> -> vector<1x8xf32>
      %15 = vector.broadcast %14 : vector<1x8xf32> to vector<8x8xf32>
      %16 = arith.mulf %11, %15 : vector<8x8xf32>
      %cst_13 = arith.constant dense<0.000000e+00> : vector<8xf32>
      %17 = vector.multi_reduction <add>, %16, %cst_13 [1] : vector<8x8xf32> to vector<8xf32>
      %18 = vector.shape_cast %17 : vector<8xf32> to vector<8x1xf32>
      %19 = tpu.transpose %18, [1, 0] : vector<8x1xf32> -> vector<1x8xf32>
      %20 = vector.broadcast %19 : vector<1x8xf32> to vector<8x8xf32>
      %21 = arith.mulf %11, %20 : vector<8x8xf32>
      %cst_14 = arith.constant dense<0.000000e+00> : vector<8xf32>
      %22 = vector.multi_reduction <add>, %21, %cst_14 [1] : vector<8x8xf32> to vector<8xf32>
      %23 = vector.shape_cast %22 : vector<8xf32> to vector<8x1xf32>
      %24 = arith.mulf %23, %18 : vector<8x1xf32>
      %25 = vector.shape_cast %24 : vector<8x1xf32> to vector<1x8x1xf32>
      %cst_15 = arith.constant dense<0.000000e+00> : vector<1xf32>
      %26 = vector.multi_reduction <add>, %25, %cst_15 [1, 2] : vector<1x8x1xf32> to vector<1xf32>
      %27 = vector.shape_cast %26 : vector<1xf32> to vector<1x1x1xf32>
      %28 = vector.extract %27[0, 0, 0] : f32 from vector<1x1x1xf32>
      %29 = arith.mulf %18, %18 : vector<8x1xf32>
      %30 = vector.shape_cast %29 : vector<8x1xf32> to vector<1x8x1xf32>
      %cst_16 = arith.constant dense<0.000000e+00> : vector<1xf32>
      %31 = vector.multi_reduction <add>, %30, %cst_16 [1, 2] : vector<1x8x1xf32> to vector<1xf32>
      %32 = vector.shape_cast %31 : vector<1xf32> to vector<1x1x1xf32>
      %33 = vector.extract %32[0, 0, 0] : f32 from vector<1x1x1xf32>
      %34 = arith.divf %28, %33 : f32
      %35 = tpu.iota {dimensions = array<i32: 0>} : vector<8x8xi32>
      %36 = tpu.iota {dimensions = array<i32: 1>} : vector<8x8xi32>
      %37 = arith.cmpi eq, %35, %36 : vector<8x8xi32>
      %38 = vector.broadcast %34 : f32 to vector<8x8xf32>
      %39 = arith.subf %11, %38 : vector<8x8xf32>
      %40 = arith.select %37, %39, %11 : vector<8x8xi1>, vector<8x8xf32>
      %41 = tpu.transpose %13, [1, 0] : vector<8x1xf32> -> vector<1x8xf32>
      %42 = vector.broadcast %41 : vector<1x8xf32> to vector<8x8xf32>
      %43 = arith.mulf %40, %42 : vector<8x8xf32>
      %cst_17 = arith.constant dense<0.000000e+00> : vector<8xf32>
      %44 = vector.multi_reduction <add>, %43, %cst_17 [1] : vector<8x8xf32> to vector<8xf32>
      %45 = vector.shape_cast %44 : vector<8xf32> to vector<8x1xf32>
      %46 = tpu.transpose %45, [1, 0] : vector<8x1xf32> -> vector<1x8xf32>
      %47 = vector.broadcast %46 : vector<1x8xf32> to vector<8x8xf32>
      %48 = arith.mulf %40, %47 : vector<8x8xf32>
      %cst_18 = arith.constant dense<0.000000e+00> : vector<8xf32>
      %49 = vector.multi_reduction <add>, %48, %cst_18 [1] : vector<8x8xf32> to vector<8xf32>
      %50 = vector.shape_cast %49 : vector<8xf32> to vector<8x1xf32>
      %51 = arith.mulf %50, %45 : vector<8x1xf32>
      %52 = vector.shape_cast %51 : vector<8x1xf32> to vector<1x8x1xf32>
      %cst_19 = arith.constant dense<0.000000e+00> : vector<1xf32>
      %53 = vector.multi_reduction <add>, %52, %cst_19 [1, 2] : vector<1x8x1xf32> to vector<1xf32>
      %54 = vector.shape_cast %53 : vector<1xf32> to vector<1x1x1xf32>
      %55 = vector.extract %54[0, 0, 0] : f32 from vector<1x1x1xf32>
      %56 = arith.mulf %45, %45 : vector<8x1xf32>
      %57 = vector.shape_cast %56 : vector<8x1xf32> to vector<1x8x1xf32>
      %cst_20 = arith.constant dense<0.000000e+00> : vector<1xf32>
      %58 = vector.multi_reduction <add>, %57, %cst_20 [1, 2] : vector<1x8x1xf32> to vector<1xf32>
      %59 = vector.shape_cast %58 : vector<1xf32> to vector<1x1x1xf32>
      %60 = vector.extract %59[0, 0, 0] : f32 from vector<1x1x1xf32>
      %61 = arith.divf %55, %60 : f32
      %62 = arith.addf %61, %34 : f32
      %63 = arith.subf %34, %62 : f32
      %64 = arith.mulf %63, %63 : f32
      %cst_21 = arith.constant 0.00999999977 : f32
      %65 = arith.mulf %cst_21, %64 : f32
      %cst_22 = arith.constant 1.000000e+00 : f32
      %66 = vector.broadcast %cst_22 : f32 to vector<1x1xf32>
      %67 = vector.broadcast %65 : f32 to vector<1x1xf32>
      %68 = arith.mulf %67, %66 : vector<1x1xf32>
      %c0_23 = arith.constant 0 : index
      %c0_24 = arith.constant 0 : index
      %69 = vector.load %arg3[%c0_23, %c0_24] : memref<1x1xf32, #tpu.memory_space<vmem>>, vector<1x1xf32>
      tpu.vector_store %arg3[%c0_23, %c0_24], %68 {strides = array<i32>} : memref<1x1xf32, #tpu.memory_space<vmem>>, vector<1x1xf32>,
    } else {
    }
    return
  }
  func.func @transform_0(%arg0: i32) -> (i32, i32) {
    %c0_i32 = arith.constant 0 : i32
    %c0_i32_0 = arith.constant 0 : i32
    return %c0_i32, %arg0 : i32, i32
  }
  func.func @transform_1(%arg0: i32) -> (i32, i32) {
    %c0_i32 = arith.constant 0 : i32
    %c0_i32_0 = arith.constant 0 : i32
    %c0_i32_1 = arith.constant 0 : i32
    return %c0_i32, %c0_i32_0 : i32, i32
  }
  func.func @transform_2(%arg0: i32) -> (i32, i32) {
    %c0_i32 = arith.constant 0 : i32
    %c0_i32_0 = arith.constant 0 : i32
    %c0_i32_1 = arith.constant 0 : i32
    return %c0_i32, %c0_i32_0 : i32, i32
  }
}

</mosaic_0001>

<bundles_post_ra>
// kernel: tpu_custom_call.1
= control target key start
LH: loop header
LB: loop body
LE: loop exit
PB: predicated region body
PF: predicated region fallthrough
CT: control target
= control target key end

     0   :  { %7 = vsyncpa [#allocation4], 0  ;;  %s547_s0 = inlined_call_operand.hbm [shape: f32[8,512], index: 0, kind: input, shape index: {}]   ;;  %s548_s1 = inlined_call_operand.vmem [shape: f32[8,2], index: 1, kind: input, shape index: {}]   ;;  %s549_s2 = inlined_call_operand.hbm [shape: f32[1,1], index: 2, kind: output, shape index: {}]  }
   0x1   :  { %8 = vsyncpa [#allocation5], 0  ;;  %s494_s9 = smov [#allocation3]  }
   0x2   :  { %s15_s10 = sshll.u32 %s494_s9, 4  ;;  %s16_s10 = int_to_ptr.vmem [resolvable:$true] %s15_s10 }
   0x3   :  { %s458_s11 = scalar_lea.vmem %s16_s10, 512  ;;  %p463_p1 = scmp.lt.s32.totalorder %s16_s10, %s16_s10 }
   0x4   :  { %p459_p0 = scmp.ne.s32.totalorder %s16_s10, %s458_s11  ;;  %p464_p2 = scmp.lt.s32.totalorder %s458_s11, %s458_s11 }
   0x6   :  { %p465_p3 = por %p464_p2, %p463_p1 }
   0x8   :  { %p466_p4 = pnand %p465_p3, %p459_p0 }
   0xa   :  { %469 = shalt.err (!%p466_p4)
}
   0xb   :  { %18 = dma.hbm_to_vmem [thread:$0]  %s547_s0, 512, %s16_s10, [#allocation4]  }
   0xc   :  { %490 = dma.done.wait [#allocation4], 512  }
   0xd   :  { %491 = vsyncadd [#allocation4], 4294966784  ;;  %v31_v0 = vld [vmem:[#allocation3 + $0x8] sm:$0xff]  ;;  %v33_v1 = vld [vmem:[#allocation3 + $0x18] sm:$0xff]  ;;  %vm28_vm0 = vcmask 64512   ;;  %v495_v5 = vmov 0.0   ;;  %v215_v6 = vlaneseq }
   0xe   :  { %v30_v2 = vld [vmem:[#allocation3] sm:$0xff]  ;;  %65 = vmatprep.subr.mxu0 %v31_v0  ;;  %135 = vmatprep.subr.mxu1 %v33_v1  ;;  %v32_v3 = vld [vmem:[#allocation3 + $0x10] sm:$0xff]  ;;  %v182_v4 = vld [vmem:[%s548_s1] sm:$0xff]  ;;  %29 = vst.msk [vmem:[#allocation2] sm:$0xff] %vm28_vm0, %v495_v5  ;;  %s496_s0 = smov 127   ;;  %vm264_vm1 = vcmask 7168  }
   0xf   :  { %66 = vmatpush1.xpose.msra.mxu0 %v30_v2  ;;  %136 = vmatpush1.xpose.msra.mxu1 %v32_v3  ;;  %v520_v11 = vshrl.u32 %v215_v6, 7  ;;  %v293_v48 = vand.u32 127, %v215_v6  ;;  %s497_s26 = smov [#allocation6]   ;;  %vm413_vm3 = vcmask 0  }
  0x10   :  { %99 = vmatprep.mubr.f32.mxu0 %v31_v0  ;;  %169 = vmatprep.mubr.f32.mxu1 %v33_v1  ;;  %s421_s27 = sshll.u32 %s497_s26, 4  ;;  %s422_s27 = int_to_ptr.vmem [resolvable:$true] %s421_s27 }
  0x11   :  { %183 = vxpose.xlu0.b32.start.end [1/1] (short) (narrow) %v182_v4, 8  ;;  %v524_v15 = vsub.s32 0, %v520_v11  ;;  %vm294_vm2 = vcmp.eq.s32.totalorder %v520_v11, %v293_v48  ;;  %s470_s29 = scalar_lea.vmem %s422_s27, 16  ;;  %s474_s30 = scalar_lea.vmem %s422_s27, 32 }
  0x12   :  { %100 = vmatmul.mubr.f32.vlgmr.msra.gmra.mxu0 %v30_v2  ;;  %170 = vmatmul.mubr.f32.vlgmr.msra.gmra.mxu1 %v32_v3  ;;  %p471_p5 = scmp.ne.s32.totalorder %s422_s27, %s470_s29  ;;  %p475_p6 = scmp.lt.s32.totalorder %s422_s27, %s422_s27 }
  0x13   :  { %p476_p7 = scmp.lt.s32.totalorder %s474_s30, %s470_s29 }
  0x15   :  { %v34_v8 = vld [vmem:[#allocation2] sm:$0xff]  ;;  %p477_p8 = por %p476_p7, %p475_p6 }
  0x17   :  { %p478_p9 = pnand %p477_p8, %p471_p5 }
  0x8d   :  { %v199_v16 = vpop.trf.xlu0 }
  0x8e   :  { %v218_v17 = vrot.slane %v199_v16, %v524_v15 }
  0xd2   :  { %v101_v7 = vpop.f32.mrf.mxu0  ;;  %v171_v9 = vpop.f32.mrf.mxu1 }
  0xd3   :  { %v172_v10 = vadd.f32 %v171_v9, %v101_v7 }
  0xd4   :  { %v103_v12 = vpop.f32.mrf.mxu0  ;;  %v173_v13 = vpop.f32.mrf.mxu1 }
  0xd5   :  { %v175_v14 = vadd.f32 %v172_v10, %v34_v8 }
  0xd7   :  { %177 = vst.msk [vmem:[#allocation2] sm:$0xff] %vm28_vm0, %v175_v14 }
  0xde   :  { %v181_v18 = vld [vmem:[#allocation2] sm:$0xff] }
  0xdf   :  { %v219_v19 = vmul.f32 %v218_v17, %v181_v18 }
  0xe1   :  { %v220_v20 = vsel %vm28_vm0, %v219_v19, 0.0 }
  0xe2   :  { %221 = vadd.xlane.f32.xlu0 %v220_v20 }
  0xf8   :  { %299 = vrot.lane.b32.xlu0 %v182_v4, %s496_s0 }
 0x16b   :  { %v222_v21 = vpop.xlane.xlu0 %221 }
 0x16c   :  { %223 = vxpose.xlu1.b32.start.end [1/1] (short) (narrow) %v222_v21, 8  ;;  %v275_v29 = vmul.f32 %v222_v21, %v222_v21 }
 0x16e   :  { %v276_v30 = vsel %vm264_vm1, %v275_v29, 0.0 }
 0x16f   :  { %v300_v31 = vpop.permute.xlu0 %299 }
 0x1e8   :  { %v239_v22 = vpop.trf.xlu1 }
 0x1e9   :  { %v258_v23 = vrot.slane %v239_v22, %v524_v15 }
 0x1eb   :  { %v259_v24 = vmul.f32 %v258_v23, %v181_v18 }
 0x1ed   :  { %v260_v25 = vsel %vm28_vm0, %v259_v24, 0.0 }
 0x1ee   :  { %261 = vadd.xlane.f32.xlu1 %v260_v25 }
 0x277   :  { %v262_v26 = vpop.xlane.xlu1 %261 }
 0x278   :  { %v263_v27 = vmul.f32 %v262_v26, %v222_v21 }
 0x27a   :  { %v265_v28 = vsel %vm264_vm1, %v263_v27, 0.0 }
 0x27b   :  { %266 = vadd.xlane.f32.xlu1 %v265_v28 }
 0x27f   :  { %277 = vadd.xlane.f32.xlu1 %v276_v30 }
 0x2b2   :  { %302 = vxpose.xlu1.b32.start.end [1/1] (short) (narrow) %v300_v31, 8 }
 0x304   :  { %v267_v32 = vpop.xlane.xlu1 %266 }
 0x305   :  { %v268_v33 = vrot.slane %v267_v32, 4 }
 0x307   :  { %v269_v34 = vadd.f32 %v268_v33, %v267_v32 }
 0x308   :  { %v278_v35 = vpop.xlane.xlu1 %277 }
 0x309   :  { %v270_v36 = vrot.slane %v269_v34, 2  ;;  %v279_v37 = vrot.slane %v278_v35, 4 }
 0x30b   :  { %v280_v38 = vadd.f32 %v279_v37, %v278_v35  ;;  %v271_v39 = vadd.f32 %v270_v36, %v269_v34 }
 0x30d   :  { %v281_v40 = vrot.slane %v280_v38, 2  ;;  %v272_v41 = vrot.slane %v271_v39, 1 }
 0x30f   :  { %v273_v42 = vadd.f32 %v272_v41, %v271_v39  ;;  %v282_v43 = vadd.f32 %v281_v40, %v280_v38 }
 0x311   :  { %430 = vpush %v273_v42  ;;  %v283_v44 = vrot.slane %v282_v43, 1 }
 0x313   :  { %v284_v45 = vadd.f32 %v283_v44, %v282_v43 }
 0x315   :  { %432 = vpush %v284_v45 }
 0x32e   :  { %v318_v49 = vpop.trf.xlu1 }
 0x32f   :  { %v337_v51 = vrot.slane %v318_v49, %v524_v15 }
 0x342   :  { %s431_s1 = spop %430 }
 0x346   :  { %s433_s16 = spop %432 }
 0x347   :  { %v286_v46 = vstv %s433_s16 }
 0x348   :  { %446 = vrcp.f32 %v286_v46 }
 0x355   :  { %v447_v47 = vpop.eup %446 }
 0x356   :  { %434 = vpush %v447_v47 }
 0x387   :  { %s435_s17 = spop %434 }
 0x388   :  { %s532_s18 = smul.f32 %s435_s17, %s431_s1 }
 0x38a   :  { %v295_v50 = vstv %s532_s18 }
 0x38b   :  { %v296_v52 = vsub.f32 %v181_v18, %v295_v50 }
 0x38d   :  { %v297_v53 = vsel %vm294_vm2, %v296_v52, %v181_v18 }
 0x38e   :  { %v338_v54 = vmul.f32 %v337_v51, %v297_v53 }
 0x390   :  { %v339_v55 = vsel %vm28_vm0, %v338_v54, 0.0 }
 0x391   :  { %340 = vadd.xlane.f32.xlu0 %v339_v55 }
 0x41a   :  { %v341_v56 = vpop.xlane.xlu0 %340 }
 0x41b   :  { %342 = vxpose.xlu0.b32.start.end [1/1] (short) (narrow) %v341_v56, 8  ;;  %v393_v0 = vmul.f32 %v341_v56, %v341_v56 }
 0x41d   :  { %v394_v1 = vsel %vm264_vm1, %v393_v0, 0.0 }
 0x497   :  { %v358_v57 = vpop.trf.xlu0 }
 0x498   :  { %v377_v58 = vrot.slane %v358_v57, %v524_v15 }
 0x49a   :  { %v378_v59 = vmul.f32 %v377_v58, %v297_v53 }
 0x49c   :  { %v379_v60 = vsel %vm28_vm0, %v378_v59, 0.0 }
 0x49d   :  { %380 = vadd.xlane.f32.xlu1 %v379_v60 }
 0x526   :  { %v381_v61 = vpop.xlane.xlu1 %380 }
 0x527   :  { %v382_v62 = vmul.f32 %v381_v61, %v341_v56 }
 0x529   :  { %v383_v63 = vsel %vm264_vm1, %v382_v62, 0.0 }
 0x52a   :  { %384 = vadd.xlane.f32.xlu1 %v383_v63 }
 0x52e   :  { %395 = vadd.xlane.f32.xlu1 %v394_v1 }
 0x5b3   :  { %v385_v2 = vpop.xlane.xlu1 %384 }
 0x5b4   :  { %v386_v3 = vrot.slane %v385_v2, 4 }
 0x5b6   :  { %v387_v4 = vadd.f32 %v386_v3, %v385_v2 }
 0x5b7   :  { %v396_v5 = vpop.xlane.xlu1 %395 }
 0x5b8   :  { %v388_v6 = vrot.slane %v387_v4, 2  ;;  %v397_v7 = vrot.slane %v396_v5, 4 }
 0x5ba   :  { %v398_v8 = vadd.f32 %v397_v7, %v396_v5  ;;  %v389_v9 = vadd.f32 %v388_v6, %v387_v4 }
 0x5bc   :  { %v399_v10 = vrot.slane %v398_v8, 2  ;;  %v390_v11 = vrot.slane %v389_v9, 1 }
 0x5be   :  { %v400_v12 = vadd.f32 %v399_v10, %v398_v8  ;;  %v391_v13 = vadd.f32 %v390_v11, %v389_v9 }
 0x5c0   :  { %436 = vpush %v391_v13  ;;  %v401_v14 = vrot.slane %v400_v12, 1 }
 0x5c2   :  { %v402_v15 = vadd.f32 %v401_v14, %v400_v12 }
 0x5c4   :  { %438 = vpush %v402_v15 }
 0x5f1   :  { %s437_s19 = spop %436 }
 0x5f5   :  { %s439_s20 = spop %438 }
 0x5f6   :  { %v404_v16 = vstv %s439_s20 }
 0x5f7   :  { %448 = vrcp.f32 %v404_v16 }
 0x604   :  { %v449_v17 = vpop.eup %448 }
 0x605   :  { %440 = vpush %v449_v17 }
 0x636   :  { %s441_s21 = spop %440 }
 0x637   :  { %s407_s22 = smul.f32 %s441_s21, %s437_s19 }
 0x639   :  { %s408_s23 = sadd.f32 %s407_s22, %s532_s18 }
 0x63b   :  { %s409_s24 = ssub.f32 %s532_s18, %s408_s23 }
 0x63d   :  { %s410_s25 = smul.f32 %s409_s24, %s409_s24 }
 0x63f   :  { %s411_s28 = smul.f32 0.01, %s410_s25 }
 0x641   :  { %v412_v18 = vstv %s411_s28 }
 0x642   :  { %414 = vst.msk [vmem:[#allocation6] sm:$0x1] %vm413_vm3, %v412_v18 }
 0x643   :  { %481 = shalt.err (!%p478_p9)
}
 0x644   :  { %424 = dma.vmem_to_hbm [thread:$0]  %s422_s27, 16, %s549_s2, [#allocation5]  }
 0x645   :  { %492 = dma.done.wait [#allocation5], 16  }
 0x646   :  { %493 = vsyncadd [#allocation5], 4294967280 }
 0x647   :  { %428 = vsyncpa [#allocation4], 1 }
 0x648   :  { %429 = vsyncpa [#allocation5], 1 }

</bundles_post_ra>
